<compile_context>
chip_gen: v7x
topology: tpu7x:2x2x1
jax: 0.10.0
libtpu: 0.0.40
codegen_flags: <defaults>
</compile_context>

<pallas_src>
import jax
import jax.numpy as jnp
from jax.experimental import pallas as pl
from jax.experimental.pallas import tpu as pltpu

MAX_TILE_B = 16384   # lane-tile sweep parameter (8K-32K amortizes per-step overhead)
MIN_TILES = 8        # keep >=2 (ideally 4-8) grid steps -> both v7x TCs get work
_HP = jax.lax.Precision.HIGHEST


def _mlp_kernel(xt_ref, w1_ref, b1_ref, w2_ref, b2_ref, w3p_ref, b3_ref, o_ref):
    # Transposed layout, batch on the 128-lane axis:
    #   xt_ref : [2, TILE_B]    w1_ref : [16, 2]   b1_ref : [16, 1]
    #   w2_ref : [16, 16]       b2_ref : [16, 1]
    #   w3p_ref: [8, 16] (row 0 = W3, rows 1..7 zero)   b3_ref : SMEM (1,)
    #   o_ref  : [1, TILE_B]  (lane-dense, unmasked stores)
    x = xt_ref[...]                                   # [2, TILE_B] f32

    # Layer 1 (K=2): two VPU broadcast-FMAs; broadcast operands hoisted as named values.
    x0 = x[0:1, :]                                    # [1, TILE_B]
    x1 = x[1:2, :]
    w1c0 = w1_ref[:, 0:1]                             # [16, 1]
    w1c1 = w1_ref[:, 1:2]
    b1 = b1_ref[...]                                  # [16, 1]
    h1 = jnp.maximum(w1c0 * x0 + w1c1 * x1 + b1, 0.0)  # [16, TILE_B]

    # Layer 2: MXU matmul, N = TILE_B fills the lanes, f32 accumulation.
    h2 = jnp.dot(w2_ref[...], h1, precision=_HP,
                 preferred_element_type=jnp.float32) + b2_ref[...]
    h2 = jnp.maximum(h2, 0.0)                         # [16, TILE_B]

    # Layer 3 (M=1, K=16): MXU (vmatmul slot nearly idle) instead of VPU mul + XLU
    # sublane-reduce.  w3 is zero-padded to 8 rows; take row 0.  b3 is an SMEM scalar.
    h3 = jnp.dot(w3p_ref[...], h2, precision=_HP,
                 preferred_element_type=jnp.float32)  # [8, TILE_B]
    out = h3[0:1, :] + b3_ref[0]                      # [1, TILE_B]
    o_ref[...] = out.astype(o_ref.dtype)              # lane-dense store


def _pick_tile(batch):
    """Largest lane-tile <= MAX_TILE_B that still leaves >= MIN_TILES grid steps."""
    t = pl.cdiv(max(batch, 1), MIN_TILES)
    t = pl.cdiv(t, 128) * 128
    return max(128, min(MAX_TILE_B, t))


@jax.jit
def simple_value_network_t(xt, params):
    """Feature-major input xt: [input_dim, B] float32 -> [1, B] float32.

    Preferred entry point: callers holding features feature-major skip the transpose pass.
    """
    w1, b1, w2, b2, w3, b3 = params
    in_dim, B = xt.shape
    hid = w1.shape[0]

    tile_b = _pick_tile(B)
    b_pad = pl.cdiv(B, tile_b) * tile_b
    xt = xt.astype(jnp.float32)
    if b_pad != B:
        xt = jnp.pad(xt, ((0, 0), (0, b_pad - B)))    # single fused pad copy

    # Kernel-friendly parameter layouts (tiny, one-time reshapes).
    w1k = w1.astype(jnp.float32)                      # [hid, in]
    b1c = b1.reshape(hid, 1).astype(jnp.float32)      # [hid, 1]
    w2k = w2.astype(jnp.float32)                      # [hid, hid]
    b2c = b2.reshape(hid, 1).astype(jnp.float32)      # [hid, 1]
    w3p = jnp.zeros((8, hid), jnp.float32).at[0, :].set(
        w3.reshape(hid).astype(jnp.float32))          # [8, hid], sublane-aligned M
    b3s = b3.reshape(1).astype(jnp.float32)           # (1,) SMEM scalar

    n_tiles = b_pad // tile_b
    const = lambda i: (0, 0)

    cp = dict(dimension_semantics=("parallel",))
    if tile_b >= 32768:
        # v5e's default scoped VMEM is 16 MiB; very large swept tiles need headroom.
        cp["vmem_limit_bytes"] = 64 * 1024 * 1024

    out_t = pl.pallas_call(
        _mlp_kernel,
        out_shape=jax.ShapeDtypeStruct((1, b_pad), jnp.float32),
        grid=(n_tiles,),
        in_specs=[
            pl.BlockSpec((in_dim, tile_b), lambda i: (0, i)),   # x^T tile (lane-dense)
            pl.BlockSpec((hid, in_dim), const),                 # W1 (VMEM-resident)
            pl.BlockSpec((hid, 1), const),                      # b1
            pl.BlockSpec((hid, hid), const),                    # W2
            pl.BlockSpec((hid, 1), const),                      # b2
            pl.BlockSpec((8, hid), const),                      # W3 (padded rows)
            pl.BlockSpec(memory_space=pltpu.MemorySpace.SMEM),  # b3 scalar
        ],
        out_specs=pl.BlockSpec((1, tile_b), lambda i: (0, i)),
        compiler_params=pltpu.CompilerParams(**cp),
    )(xt, w1k, b1c, w2k, b2c, w3p, b3s)

    return out_t[:, :B]


@jax.jit
def simple_value_network(x, params):
    """x: [B, input_dim] (PyTorch layout) -> [B, 1], matching the nn.Sequential forward."""
    out_t = simple_value_network_t(x.T, params)       # one fused transpose(+pad) copy
    return out_t.T                                    # [B, 1]


def init_params(key, input_dim=2, hidden_dim=16):
    """Deterministic init mimicking nn.Linear (PyTorch layout: W [out, in], b [out])."""
    ks = jax.random.split(key, 6)

    def lin(kw, kb, fan_in, fan_out):
        bound = 1.0 / jnp.sqrt(jnp.float32(fan_in))
        w = jax.random.uniform(kw, (fan_out, fan_in), jnp.float32, -bound, bound)
        b = jax.random.uniform(kb, (fan_out,), jnp.float32, -bound, bound)
        return w, b

    w1, b1 = lin(ks[0], ks[1], input_dim, hidden_dim)
    w2, b2 = lin(ks[2], ks[3], hidden_dim, hidden_dim)
    w3, b3 = lin(ks[4], ks[5], hidden_dim, 1)
    return (w1, b1, w2, b2, w3, b3)


def _reference(x, params):
    w1, b1, w2, b2, w3, b3 = params
    h = jnp.maximum(jnp.dot(x, w1.T, precision=_HP) + b1, 0.0)
    h = jnp.maximum(jnp.dot(h, w2.T, precision=_HP) + b2, 0.0)
    return jnp.dot(h, w3.T, precision=_HP) + b3


if __name__ == "__main__":
    key = jax.random.PRNGKey(0)
    k_param, k_x1, k_x2 = jax.random.split(key, 3)

    input_dim, hidden_dim = 2, 16
    params = init_params(k_param, input_dim, hidden_dim)

    # Small case: single (padded) tile.
    x_small = jax.random.normal(k_x1, (8, input_dim), jnp.float32)
    out_small = simple_value_network(x_small, params)
    jax.block_until_ready(out_small)
    assert out_small.shape == (8, 1)
    assert jnp.allclose(out_small, _reference(x_small, params), atol=1e-3, rtol=1e-3)

    # Ragged multi-tile case: exercises the batch grid + padding path (6 grid steps).
    x_big = jax.random.normal(k_x2, (700, input_dim), jnp.float32)
    out_big = simple_value_network(x_big, params)
    jax.block_until_ready(out_big)
    assert out_big.shape == (700, 1)
    assert jnp.allclose(out_big, _reference(x_big, params), atol=1e-3, rtol=1e-3)

    print("KERNEL_OK")
</pallas_src>

<mosaic_0001>
module attributes {stable_mosaic.version = 11 : i64} {
  func.func @_mlp_kernel(%arg0: i32, %arg1: memref<2x128xf32, #tpu.memory_space<vmem>>, %arg2: memref<16x2xf32, #tpu.memory_space<vmem>>, %arg3: memref<16x1xf32, #tpu.memory_space<vmem>>, %arg4: memref<16x16xf32, #tpu.memory_space<vmem>>, %arg5: memref<16x1xf32, #tpu.memory_space<vmem>>, %arg6: memref<8x16xf32, #tpu.memory_space<vmem>>, %arg7: memref<1xf32, #tpu.memory_space<smem>>, %arg8: memref<1x128xf32, #tpu.memory_space<vmem>>) attributes {dimension_semantics = [#tpu.dimension_semantics<parallel>], iteration_bounds = array<i64: 1>, scalar_prefetch = 0 : i64, scratch_operands = 0 : i64, tpu.core_type = #tpu.core_type<tc>, window_params = [{transform_indices = @transform_0, window_bounds = array<i64: 2, 128>}, {pipeline_mode = #tpu.pipeline_mode<synchronous>, transform_indices = @transform_1, window_bounds = array<i64: 16, 2>}, {pipeline_mode = #tpu.pipeline_mode<synchronous>, transform_indices = @transform_2, window_bounds = array<i64: 16, 1>}, {pipeline_mode = #tpu.pipeline_mode<synchronous>, transform_indices = @transform_3, window_bounds = array<i64: 16, 16>}, {pipeline_mode = #tpu.pipeline_mode<synchronous>, transform_indices = @transform_4, window_bounds = array<i64: 16, 1>}, {pipeline_mode = #tpu.pipeline_mode<synchronous>, transform_indices = @transform_5, window_bounds = array<i64: 8, 16>}, {transform_indices = @transform_6, window_bounds = array<i64: 1>}, {transform_indices = @transform_7, window_bounds = array<i64: 1, 128>}]} {
    %c0 = arith.constant 0 : index
    %c0_0 = arith.constant 0 : index
    %0 = vector.load %arg1[%c0, %c0_0] : memref<2x128xf32, #tpu.memory_space<vmem>>, vector<2x128xf32>
    %1 = vector.extract_strided_slice %0 {offsets = [0, 0], sizes = [1, 128], strides = [1, 1]} : vector<2x128xf32> to vector<1x128xf32>
    %2 = vector.extract_strided_slice %0 {offsets = [1, 0], sizes = [1, 128], strides = [1, 1]} : vector<2x128xf32> to vector<1x128xf32>
    %c0_1 = arith.constant 0 : index
    %c0_2 = arith.constant 0 : index
    %3 = vector.load %arg2[%c0_1, %c0_2] : memref<16x2xf32, #tpu.memory_space<vmem>>, vector<16x1xf32>
    %c0_3 = arith.constant 0 : index
    %c1 = arith.constant 1 : index
    %4 = vector.load %arg2[%c0_3, %c1] : memref<16x2xf32, #tpu.memory_space<vmem>>, vector<16x1xf32>
    %c0_4 = arith.constant 0 : index
    %c0_5 = arith.constant 0 : index
    %5 = vector.load %arg3[%c0_4, %c0_5] : memref<16x1xf32, #tpu.memory_space<vmem>>, vector<16x1xf32>
    %6 = vector.broadcast %3 : vector<16x1xf32> to vector<16x128xf32>
    %7 = vector.broadcast %1 : vector<1x128xf32> to vector<16x128xf32>
    %8 = arith.mulf %6, %7 : vector<16x128xf32>
    %9 = vector.broadcast %4 : vector<16x1xf32> to vector<16x128xf32>
    %10 = vector.broadcast %2 : vector<1x128xf32> to vector<16x128xf32>
    %11 = arith.mulf %9, %10 : vector<16x128xf32>
    %12 = arith.addf %8, %11 : vector<16x128xf32>
    %13 = vector.broadcast %5 : vector<16x1xf32> to vector<16x128xf32>
    %14 = arith.addf %12, %13 : vector<16x128xf32>
    %cst = arith.constant 0.000000e+00 : f32
    %15 = vector.broadcast %cst : f32 to vector<16x128xf32>
    %16 = arith.maximumf %14, %15 : vector<16x128xf32>
    %c0_6 = arith.constant 0 : index
    %c0_7 = arith.constant 0 : index
    %17 = vector.load %arg4[%c0_6, %c0_7] : memref<16x16xf32, #tpu.memory_space<vmem>>, vector<16x16xf32>
    %cst_8 = arith.constant dense<0.000000e+00> : vector<16x128xf32>
    %18 = tpu.matmul %17, %16, %cst_8 {dimension_numbers = #tpu.dot_dimension_numbers<[1], [0], [0], [1], [0, 0, 1, 1], [], []>, precision = #tpu.contract_precision<fp32>} : vector<16x16xf32>, vector<16x128xf32>, vector<16x128xf32> -> vector<16x128xf32>
    %c0_9 = arith.constant 0 : index
    %c0_10 = arith.constant 0 : index
    %19 = vector.load %arg5[%c0_9, %c0_10] : memref<16x1xf32, #tpu.memory_space<vmem>>, vector<16x1xf32>
    %20 = vector.broadcast %19 : vector<16x1xf32> to vector<16x128xf32>
    %21 = arith.addf %18, %20 : vector<16x128xf32>
    %cst_11 = arith.constant 0.000000e+00 : f32
    %22 = vector.broadcast %cst_11 : f32 to vector<16x128xf32>
    %23 = arith.maximumf %21, %22 : vector<16x128xf32>
    %c0_12 = arith.constant 0 : index
    %c0_13 = arith.constant 0 : index
    %24 = vector.load %arg6[%c0_12, %c0_13] : memref<8x16xf32, #tpu.memory_space<vmem>>, vector<8x16xf32>
    %cst_14 = arith.constant dense<0.000000e+00> : vector<8x128xf32>
    %25 = tpu.matmul %24, %23, %cst_14 {dimension_numbers = #tpu.dot_dimension_numbers<[1], [0], [0], [1], [0, 0, 1, 1], [], []>, precision = #tpu.contract_precision<fp32>} : vector<8x16xf32>, vector<16x128xf32>, vector<8x128xf32> -> vector<8x128xf32>
    %26 = vector.extract_strided_slice %25 {offsets = [0, 0], sizes = [1, 128], strides = [1, 1]} : vector<8x128xf32> to vector<1x128xf32>
    %c0_15 = arith.constant 0 : index
    %27 = memref.load %arg7[%c0_15] : memref<1xf32, #tpu.memory_space<smem>>
    %28 = vector.broadcast %27 : f32 to vector<1x128xf32>
    %29 = arith.addf %26, %28 : vector<1x128xf32>
    %c0_16 = arith.constant 0 : index
    %c0_17 = arith.constant 0 : index
    %30 = vector.load %arg8[%c0_16, %c0_17] : memref<1x128xf32, #tpu.memory_space<vmem>>, vector<1x128xf32>
    tpu.vector_store %arg8[%c0_16, %c0_17], %29 {strides = array<i32>} : memref<1x128xf32, #tpu.memory_space<vmem>>, vector<1x128xf32>,
    return
  }
  func.func @transform_0(%arg0: i32) -> (i32, i32) {
    %c0_i32 = arith.constant 0 : i32
    %c0_i32_0 = arith.constant 0 : i32
    return %c0_i32, %arg0 : i32, i32
  }
  func.func @transform_1(%arg0: i32) -> (i32, i32) {
    %c0_i32 = arith.constant 0 : i32
    %c0_i32_0 = arith.constant 0 : i32
    %c0_i32_1 = arith.constant 0 : i32
    return %c0_i32, %c0_i32_0 : i32, i32
  }
  func.func @transform_2(%arg0: i32) -> (i32, i32) {
    %c0_i32 = arith.constant 0 : i32
    %c0_i32_0 = arith.constant 0 : i32
    %c0_i32_1 = arith.constant 0 : i32
    return %c0_i32, %c0_i32_0 : i32, i32
  }
  func.func @transform_3(%arg0: i32) -> (i32, i32) {
    %c0_i32 = arith.constant 0 : i32
    %c0_i32_0 = arith.constant 0 : i32
    %c0_i32_1 = arith.constant 0 : i32
    return %c0_i32, %c0_i32_0 : i32, i32
  }
  func.func @transform_4(%arg0: i32) -> (i32, i32) {
    %c0_i32 = arith.constant 0 : i32
    %c0_i32_0 = arith.constant 0 : i32
    %c0_i32_1 = arith.constant 0 : i32
    return %c0_i32, %c0_i32_0 : i32, i32
  }
  func.func @transform_5(%arg0: i32) -> (i32, i32) {
    %c0_i32 = arith.constant 0 : i32
    %c0_i32_0 = arith.constant 0 : i32
    %c0_i32_1 = arith.constant 0 : i32
    return %c0_i32, %c0_i32_0 : i32, i32
  }
  func.func @transform_6(%arg0: i32) -> i32 {
    %c0_i32 = arith.constant 0 : i32
    %c0_i32_0 = arith.constant 0 : i32
    return %c0_i32 : i32
  }
  func.func @transform_7(%arg0: i32) -> (i32, i32) {
    %c0_i32 = arith.constant 0 : i32
    %c0_i32_0 = arith.constant 0 : i32
    return %c0_i32, %arg0 : i32, i32
  }
}

</mosaic_0001>

<bundles_post_ra>
// kernel: simple_value_network_t.1
= control target key start
LH: loop header
LB: loop body
LE: loop exit
PB: predicated region body
PF: predicated region fallthrough
CT: control target
= control target key end

     0   :  { %v1298_v1 = vmov 1   ;;  %v1299_v2 = vmov 0   ;;  %s1409_s0 = inlined_call_operand.vmem [shape: f32[2,128], index: 0, kind: input, shape index: {}]   ;;  %s1410_s1 = inlined_call_operand.vmem [shape: f32[16,2], index: 1, kind: input, shape index: {}]   ;;  %s1411_s2 = inlined_call_operand.vmem [shape: f32[16,1], index: 2, kind: input, shape index: {}]   ;;  %s1412_s3 = inlined_call_operand.vmem [shape: f32[16,16], index: 3, kind: input, shape index: {}]   ;;  %s1413_s4 = inlined_call_operand.vmem [shape: f32[16,1], index: 4, kind: input, shape index: {}]   ;;  %s1414_s5 = inlined_call_operand.vmem [shape: f32[8,16], index: 5, kind: input, shape index: {}]   ;;  %s1415_s6 = inlined_call_operand.<no memory space> [shape: f32[1], index: 6, kind: input, shape index: {}]   ;;  %s1416_s7 = inlined_call_operand.hbm [shape: f32[1,128], index: 7, kind: output, shape index: {}]  }
   0x1   :  { %v29_v0 = vld [vmem:[%s1410_s1] sm:$0xff]  ;;  %1272 = vset.pattern.permute.xlu1 %v1298_v1  ;;  %1271 = vset.pattern.permute.xlu0 %v1299_v2 }
   0x2   :  { %50 = vperm.xlu1 %1272, %v29_v0   ;;  %35 = vperm.xlu0 %1271, %v29_v0  }
   0x3   :  { %13 = vsyncpa [#allocation4], 0  ;;  %v30_v3 = vld [vmem:[%s1410_s1 + $0x8] sm:$0xff]  ;;  %v31_v4 = vld [vmem:[%s1411_s2] sm:$0xff]  ;;  %vm93_vm0 = vcmask 130048   ;;  %v43_v15 = vlaneseq  ;;  %v1300_v59 = vmov 0.0|0.0  }
   0x4   :  { %v32_v5 = vld [vmem:[%s1411_s2 + $0x8] sm:$0xff]  ;;  %v79_v6 = vld [vmem:[%s1412_s3] sm:$0xff]  ;;  %1235 = vmatprep.subr.bf16.mxu1 %v1300_v59  ;;  %vm1301_vm1 = vmmov 0   ;;  %v1302_v60 = vmov 0.0   ;;  %s1303_s17 = smov [#allocation3]  }
   0x5   :  { %v81_v7 = vld [vmem:[%s1413_s4] sm:$0xff]  ;;  %v95_v8 = vsel %vm93_vm0, %v79_v6, 0  ;;  %v82_v9 = vld [vmem:[%s1413_s4 + $0x8] sm:$0xff]  ;;  %v44_v16 = vshrl.u32 %v43_v15, 7  ;;  %1173 = vmatprep.mubr.msk.f32.mxu1 %vm1301_vm1, %v1302_v60  ;;  %s1077_s18 = sshll.u32 %s1303_s17, 4  ;;  %s1078_s18 = int_to_ptr.vmem [resolvable:$true] %s1077_s18 }
   0x6   :  { %54 = vperm.xlu1 %1272, %v30_v3   ;;  %40 = vperm.xlu0 %1271, %v30_v3   ;;  %v1366_v10 = vand.u32 4294901760, %v95_v8  ;;  %v28_v19 = vld [vmem:[%s1409_s0] sm:$0x3]  ;;  %v80_v20 = vld [vmem:[%s1412_s3 + $0x8] sm:$0xff]  ;;  %s1274_s19 = scalar_lea.vmem %s1078_s18, 16  ;;  %s1278_s20 = scalar_lea.vmem %s1078_s18, 32 }
   0x7   :  { %v59_v17 = vsub.s32 1, %v44_v16  ;;  %v45_v18 = vsub.s32 0, %v44_v16  ;;  %v98_v23 = vsel %vm93_vm0, %v80_v20, 0  ;;  %v604_v61 = vld [vmem:[%s1414_s5] sm:$0xff]  ;;  %p1275_p0 = scmp.ne.s32.totalorder %s1078_s18, %s1274_s19  ;;  %p1279_p1 = scmp.lt.s32.totalorder %s1078_s18, %s1078_s18 }
   0x8   :  { %v1369_v11 = vsub.f32 %v95_v8, %v1366_v10  ;;  %v177_v26 = vand.u32 4294901760, %v98_v23  ;;  %v606_v62 = vsel %vm93_vm0, %v604_v61, 0  ;;  %p1280_p2 = scmp.lt.s32.totalorder %s1278_s20, %s1274_s19 }
   0x9   :  { %v60_v21 = vrot.slane %v28_v19, %v59_v17  ;;  %v46_v22 = vrot.slane %v28_v19, %v45_v18  ;;  %v675_v63 = vand.u32 4294901760, %v606_v62 }
   0xa   :  { %1273 = vset.pattern.permute.xlu1 %v1299_v2  ;;  %67 = vperm.xlu0 %1271, %v31_v4   ;;  %v169_v12 = vand.u32 4294901760, %v1369_v11  ;;  %v178_v33 = vsub.f32 %v98_v23, %v177_v26  ;;  %p1281_p3 = por %p1280_p2, %p1279_p1 }
   0xb   :  { %72 = vperm.xlu1 %1273, %v32_v5   ;;  %v676_v0 = vsub.f32 %v606_v62, %v675_v63 }
   0xc   :  { %v170_v13 = vsub.f32 %v1369_v11, %v169_v12  ;;  %v179_v40 = vand.u32 4294901760, %v178_v33  ;;  %p1282_p4 = pnand %p1281_p3, %p1275_p0 }
   0xd   :  { %v677_v6 = vand.u32 4294901760, %v676_v0 }
   0xe   :  { %85 = vperm.xlu0 %1271, %v81_v7   ;;  %v171_v14 = vand.u32 4294901760, %v170_v13  ;;  %v180_v45 = vsub.f32 %v178_v33, %v179_v40 }
   0xf   :  { %90 = vperm.xlu1 %1273, %v82_v9  }
  0x10   :  { %1131 = vmatprep.mubr.f32.mxu0 %v171_v14  ;;  %v181_v51 = vand.u32 4294901760, %v180_v45 }
  0x81   :  { %v51_v24 = vpop.permute.xlu1 %50  ;;  %v36_v25 = vpop.permute.xlu0 %35 }
  0x82   :  { %v61_v27 = vmul.f32 %v60_v21, %v51_v24  ;;  %v47_v28 = vmul.f32 %v46_v22, %v36_v25 }
  0x84   :  { %v63_v34 = vadd.f32 %v61_v27, %v47_v28 }
  0x85   :  { %v55_v29 = vpop.permute.xlu1 %54  ;;  %v41_v30 = vpop.permute.xlu0 %40 }
  0x86   :  { %v62_v31 = vmul.f32 %v60_v21, %v55_v29  ;;  %v48_v32 = vmul.f32 %v46_v22, %v41_v30 }
  0x88   :  { %v64_v35 = vadd.f32 %v62_v31, %v48_v32 }
  0x89   :  { %v68_v36 = vpop.permute.xlu0 %67 }
  0x8a   :  { %v75_v37 = vadd.f32 %v68_v36, %v63_v34  ;;  %v73_v38 = vpop.permute.xlu1 %72 }
  0x8b   :  { %v76_v39 = vadd.f32 %v73_v38, %v64_v35 }
  0x8c   :  { %v77_v41 = vmax.f32 %v75_v37, 0.0 }
  0x8d   :  { %v78_v42 = vmax.f32 %v76_v39, 0.0  ;;  %v86_v3 = vpop.permute.xlu0 %85 }
  0x8e   :  { %v101_v43 = vand.u32 4294901760, %v77_v41  ;;  %v91_v1 = vpop.permute.xlu1 %90 }
  0x8f   :  { %v104_v44 = vand.u32 4294901760, %v78_v42 }
  0x90   :  { %v189_v46 = vsub.f32 %v77_v41, %v101_v43  ;;  %v1068_v41 = vstv %s1415_s6 }
  0x91   :  { %v1211_v47 = vpack.c.bf16 %v104_v44, %v101_v43  ;;  %v196_v48 = vsub.f32 %v78_v42, %v104_v44 }
  0x92   :  { %v190_v49 = vand.u32 4294901760, %v189_v46 }
  0x93   :  { %v197_v50 = vand.u32 4294901760, %v196_v48  ;;  %1212 = vmatprep.subr.bf16.mxu0 %v1211_v47  ;;  %v1219_v57 = vpack.c.bf16 %v196_v48, %v189_v46 }
  0x94   :  { %1214 = vmatpush3.bf16.msra.mxu0 %v1211_v47  ;;  %v191_v52 = vsub.f32 %v189_v46, %v190_v49 }
  0x95   :  { %v198_v53 = vsub.f32 %v196_v48, %v197_v50  ;;  %v1227_v58 = vpack.c.bf16 %v197_v50, %v190_v49 }
  0x96   :  { %v192_v54 = vand.u32 4294901760, %v191_v52 }
  0x97   :  { %1132 = vmatmul.mubr.f32.vlgmr.msra.gmra.mrb[0].mxu0 %v181_v51  ;;  %v199_v55 = vand.u32 4294901760, %v198_v53 }
  0x98   :  { %1138 = vmatprep.mubr.f32.mxu0 %v1366_v10 }
  0x99   :  { %v1215_v56 = vpack.c.bf16 %v199_v55, %v192_v54 }
  0x9b   :  { %1216 = vmatprep.subr.bf16.mxu0 %v1215_v56 }
  0x9c   :  { %1218 = vmatpush3.bf16.msra.mxu0 %v1215_v56 }
  0x9d   :  { %1220 = vmatprep.subr.bf16.mxu0 %v1219_v57 }
  0x9f   :  { %1139 = vmatmul.mubr.f32.vlgmr.msra.gmra.mrb[0].mxu0 %v177_v26 }
  0xa0   :  { %1222 = vmatpush3.bf16.msra.mxu0 %v1219_v57  ;;  %1145 = vmatprep.mubr.f32.mxu0 %v1369_v11  ;;  %v678_v11 = vsub.f32 %v676_v0, %v677_v6 }
  0xa1   :  { %1224 = vmatprep.subr.bf16.mxu0 %v1211_v47 }
  0xa2   :  { %v679_v17 = vand.u32 4294901760, %v678_v11 }
  0xa7   :  { %1146 = vmatmul.mubr.f32.vlgmr.msra.gmra.mrb[0].mxu0 %v178_v33 }
  0xa8   :  { %1226 = vmatpush3.bf16.msra.mxu0 %v1211_v47  ;;  %1152 = vmatprep.mubr.f32.mxu0 %v169_v12 }
  0xa9   :  { %1228 = vmatprep.subr.bf16.mxu0 %v1227_v58 }
  0xaf   :  { %1153 = vmatmul.mubr.f32.vlgmr.msra.gmra.mrb[0].mxu0 %v179_v40 }
  0xb0   :  { %1230 = vmatpush3.bf16.msra.mxu0 %v1227_v58  ;;  %1159 = vmatprep.mubr.f32.mxu0 %v1366_v10 }
  0xb1   :  { %1232 = vmatprep.subr.bf16.mxu0 %v1211_v47 }
  0xb7   :  { %1160 = vmatmul.mubr.f32.vlgmr.msra.gmra.mrb[0].mxu0 %v177_v26 }
  0xb8   :  { %1234 = vmatpush3.bf16.msra.mxu0 %v1211_v47  ;;  %1166 = vmatprep.mubr.f32.mxu0 %v1366_v10 }
  0xbf   :  { %1167 = vmatmul.mubr.f32.vlgmr.msra.gmra.mrb[0].mxu0 %v177_v26 }
 0x192   :  { %v1168_v2 = vpop.f32.mrb[0].mxu0 }
 0x193   :  { %v1253_v4 = vadd.f32 %v1168_v2, %v91_v1  ;;  %v592_v5 = vpop.f32.mrb[1].mxu0 }
 0x194   :  { %v1254_v7 = vadd.f32 %v592_v5, %v86_v3 }
 0x195   :  { %v603_v8 = vmax.f32 %v1253_v4, 0.0 }
 0x196   :  { %v602_v9 = vmax.f32 %v1254_v7, 0.0 }
 0x197   :  { %v612_v10 = vand.u32 4294901760, %v603_v8 }
 0x198   :  { %v609_v12 = vand.u32 4294901760, %v602_v9 }
 0x199   :  { %v694_v13 = vsub.f32 %v603_v8, %v612_v10 }
 0x19a   :  { %v687_v14 = vsub.f32 %v602_v9, %v609_v12  ;;  %v1236_v15 = vpack.c.bf16 %v612_v10, %v609_v12 }
 0x19b   :  { %v695_v16 = vand.u32 4294901760, %v694_v13 }
 0x19c   :  { %v688_v18 = vand.u32 4294901760, %v687_v14  ;;  %1237 = vmatpush3.bf16.msra.mxu1 %v1236_v15  ;;  %v1242_v19 = vpack.c.bf16 %v694_v13, %v687_v14 }
 0x19d   :  { %v696_v20 = vsub.f32 %v694_v13, %v695_v16  ;;  %1238 = vmatprep.subr.bf16.mxu1 %v1300_v59 }
 0x19e   :  { %v689_v21 = vsub.f32 %v687_v14, %v688_v18  ;;  %v1248_v22 = vpack.c.bf16 %v695_v16, %v688_v18 }
 0x19f   :  { %v697_v23 = vand.u32 4294901760, %v696_v20  ;;  %1174 = vmatmul.mubr.f32.vlgmr.msra.gmra.mrb[0].mxu1 %v679_v17 }
 0x1a0   :  { %v690_v24 = vand.u32 4294901760, %v689_v21  ;;  %1180 = vmatprep.mubr.msk.f32.mxu1 %vm1301_vm1, %v1302_v60 }
 0x1a2   :  { %v1239_v25 = vpack.c.bf16 %v697_v23, %v690_v24 }
 0x1a4   :  { %1240 = vmatpush3.bf16.msra.mxu1 %v1239_v25 }
 0x1a5   :  { %1241 = vmatprep.subr.bf16.mxu1 %v1300_v59 }
 0x1a7   :  { %1181 = vmatmul.mubr.f32.vlgmr.msra.gmra.mrb[2].mxu1 %v675_v63 }
 0x1a8   :  { %1243 = vmatpush3.bf16.msra.mxu1 %v1242_v19  ;;  %1187 = vmatprep.mubr.msk.f32.mxu1 %vm1301_vm1, %v1302_v60 }
 0x1a9   :  { %1244 = vmatprep.subr.bf16.mxu1 %v1300_v59 }
 0x1ab   :  { %1188 = vmatmul.mubr.f32.vlgmr.msra.gmra.mrb[4].mxu1 %v676_v0 }
 0x1ac   :  { %1246 = vmatpush3.bf16.msra.mxu1 %v1236_v15  ;;  %1194 = vmatprep.mubr.msk.f32.mxu1 %vm1301_vm1, %v1302_v60 }
 0x1ad   :  { %1247 = vmatprep.subr.bf16.mxu1 %v1300_v59 }
 0x1af   :  { %1195 = vmatmul.mubr.f32.vlgmr.msra.gmra.mrb[6].mxu1 %v677_v6 }
 0x1b0   :  { %1249 = vmatpush3.bf16.msra.mxu1 %v1248_v22  ;;  %1201 = vmatprep.mubr.msk.f32.mxu1 %vm1301_vm1, %v1302_v60 }
 0x1b1   :  { %1250 = vmatprep.subr.bf16.mxu1 %v1300_v59 }
 0x1b3   :  { %1202 = vmatmul.mubr.f32.vlgmr.msra.gmra.mrb[8].mxu1 %v675_v63 }
 0x1b4   :  { %1252 = vmatpush3.bf16.msra.mxu1 %v1236_v15  ;;  %1208 = vmatprep.mubr.msk.f32.mxu1 %vm1301_vm1, %v1302_v60 }
 0x1b7   :  { %1209 = vmatmul.mubr.f32.vlgmr.msra.gmra.mrb[10].mxu1 %v675_v63 }
 0x272   :  { %v681_v26 = vpop.f32.mrb[0].mxu1 }
 0x273   :  { %v1175_v27 = vpop.f32.mrb[1].mxu1 }
 0x27a   :  { %v762_v28 = vpop.f32.mrb[2].mxu1 }
 0x27b   :  { %v763_v29 = vadd.f32 %v762_v28, %v681_v26  ;;  %v1182_v30 = vpop.f32.mrb[3].mxu1 }
 0x27e   :  { %v838_v31 = vpop.f32.mrb[4].mxu1 }
 0x27f   :  { %v839_v32 = vadd.f32 %v838_v31, %v763_v29  ;;  %v1189_v33 = vpop.f32.mrb[5].mxu1 }
 0x282   :  { %v913_v34 = vpop.f32.mrb[6].mxu1 }
 0x283   :  { %v914_v35 = vadd.f32 %v913_v34, %v839_v32  ;;  %v1196_v36 = vpop.f32.mrb[7].mxu1 }
 0x286   :  { %v990_v37 = vpop.f32.mrb[8].mxu1 }
 0x287   :  { %v991_v38 = vadd.f32 %v990_v37, %v914_v35  ;;  %v1203_v39 = vpop.f32.mrb[9].mxu1 }
 0x28a   :  { %v1063_v40 = vpop.f32.mrb[10].mxu1 }
 0x28b   :  { %v1064_v42 = vadd.f32 %v1063_v40, %v991_v38  ;;  %v1210_v43 = vpop.f32.mrb[11].mxu1 }
 0x28d   :  { %v1069_v44 = vadd.f32 %v1068_v41, %v1064_v42 }
 0x28f   :  { %1070 = vst [vmem:[#allocation3] sm:$0x1] %v1069_v44 }
 0x290   :  { %1285 = shalt.err (!%p1282_p4)
}
 0x291   :  { %s1286_s23 = scalar_lea.hbm %s1416_s7, 16 }
 0x292   :  { %p1287_p5 = scmp.ne.s32.totalorder %s1416_s7, %s1286_s23  ;;  %p1290_p6 = scmp.lt.u32.totalorder %s1286_s23, %s1416_s7 }
 0x294   :  { %p1292_p7 = pnand %p1290_p6, %p1287_p5 }
 0x296   :  { %1295 = shalt.err (!%p1292_p7)
}
 0x297   :  { %1080 = dma.vmem_to_hbm [thread:$0]  %s1078_s18, 16, %s1416_s7, [#allocation4]  }
 0x298   :  { %1296 = dma.done.wait [#allocation4], 16  }
 0x299   :  { %1297 = vsyncadd [#allocation4], 4294967280 }
 0x29a   :  { %1084 = vsyncpa [#allocation4], 1 }

</bundles_post_ra>
